<compile_context>
chip_gen: v5e
topology: v5e:2x2
jax: 0.10.0
libtpu: 0.0.40
codegen_flags: <defaults>
</compile_context>

<pallas_src>
import functools
import math

import numpy as np
import jax
import jax.numpy as jnp
from jax.experimental import pallas as pl
from jax.experimental.pallas import tpu as pltpu

_LANES = 128
_SUBLANES = 8


def _round_up(x, m):
    return (x + m - 1) // m * m


# ---------------------------------------------------------------------------
# Kernels
# ---------------------------------------------------------------------------
def _upsample_repl_kernel(x_ref, o_ref, *, g, w):
    """Pure-replication (VPU) kernel.

    x_ref: (rblk, G*W)   -- G consecutive input image-rows folded into lanes.
    o_ref: (rblk, 4*G*W) -- for each W-wide segment s the 4W output segment is
                            [dup(s) | dup(s)], dup = column duplication.

      o[r, 4W*gg + 2W*a + 2j + b] = x[r, W*gg + j]      a, b in {0, 1}
    """
    x = x_ref[...].astype(o_ref.dtype)            # forced f32 cast (module spec)
    rblk = x.shape[0]
    y = jnp.broadcast_to(x.reshape(rblk, g, 1, w, 1), (rblk, g, 2, w, 2))
    # One fused, full-width, lane-dense store: no masked half-row stores.
    o_ref[...] = y.reshape(rblk, 4 * g * w)


def _upsample_mxu_kernel(x_ref, r_ref, o_ref):
    """Fallback: one matmul against a small, resident 0/1 replication matrix.
    Exact (each output column has exactly one 1.0), still HBM-bound."""
    x = x_ref[...].astype(jnp.float32)
    y = jnp.dot(x, r_ref[...], preferred_element_type=jnp.float32)
    o_ref[...] = y.astype(o_ref.dtype)


# ---------------------------------------------------------------------------
# Wrapper helpers
# ---------------------------------------------------------------------------
def _pick_group(num_rows, w, max_gw):
    """Fold G consecutive rows into the lane dim so the output block width
    4*G*W is a multiple of 128 (lane-dense, unmasked stores), growing G up to
    ~max_gw input lanes while it still divides the total row count."""
    g = 32 // math.gcd(w, 32)          # smallest G with (4*G*W) % 128 == 0
    if num_rows % g != 0:
        return 1                       # cannot regroup; full-width fallback
    while num_rows % (2 * g) == 0 and 2 * g * w <= max_gw:
        g *= 2
    return g


def _vmem_caps():
    """Per-generation VMEM sizing: (vmem_limit_bytes, block_budget_bytes)."""
    try:
        cap = pltpu.get_tpu_info().vmem_capacity_bytes
    except Exception:
        cap = 64 * 1024 * 1024         # conservative (v7x-sized) default
    limit = min(cap * 3 // 4, 96 * 1024 * 1024)  # v7x: 48 MiB, v5e/v6e: 96 MiB
    return limit, limit // 2           # headroom for Mosaic internal scratch


def _per_row_bytes(gw, in_itemsize, out_itemsize):
    """Lane-padded VMEM bytes per grouped row: double-buffered in/out blocks
    plus the materialized f32 intermediate / relayout scratch."""
    in_b = 2 * _round_up(gw, _LANES) * in_itemsize
    out_b = 2 * _round_up(4 * gw, _LANES) * out_itemsize
    tmp_b = 2 * _round_up(4 * gw, _LANES) * 4
    return in_b + out_b + tmp_b


def _pick_row_block(grouped_rows, per_row_bytes, budget_bytes, min_steps=8):
    """Largest multiple-of-8 row block under the VMEM budget, while keeping
    >= ~min_steps grid steps when data allows (pipelining + v7x's 2 TCs).
    No exact-divisor requirement: the partial last block is handled by Pallas."""
    if grouped_rows <= _SUBLANES:
        return grouped_rows
    cap = max(1, budget_bytes // max(1, per_row_bytes))
    cap = max(_SUBLANES, cap // _SUBLANES * _SUBLANES)
    pipelined = _round_up(pl.cdiv(grouped_rows, min_steps), _SUBLANES)
    rblk = max(_SUBLANES, min(cap, pipelined))
    return grouped_rows if rblk >= grouped_rows else rblk


def _replication_matrix(g, w):
    """(G*W, 4*G*W) 0/1 matrix such that out = x @ R is the exact nearest-2x
    duplication of each W-wide segment."""
    p = np.arange(4 * g * w)
    src = (p // (4 * w)) * w + (p % (2 * w)) // 2
    return jnp.asarray((src[None, :] == np.arange(g * w)[:, None]).astype(np.float32))


@functools.lru_cache(maxsize=None)
def _replication_path_supported(g, w, in_dtype, out_dtype):
    """One-time, memoized compile probe (a *static* capability choice, not a
    per-call try/except around the real computation): does this Mosaic build
    lower the lane-interleaving broadcast+reshape of the replication kernel?"""
    rows = _SUBLANES
    call = pl.pallas_call(
        functools.partial(_upsample_repl_kernel, g=g, w=w),
        out_shape=jax.ShapeDtypeStruct((rows, 4 * g * w), out_dtype),
        grid=(1,),
        in_specs=[pl.BlockSpec((rows, g * w), lambda i: (i, 0))],
        out_specs=pl.BlockSpec((rows, 4 * g * w), lambda i: (i, 0)),
    )
    try:
        jax.jit(call).lower(jax.ShapeDtypeStruct((rows, g * w), in_dtype)).compile()
        return True
    except Exception:
        return False


# ---------------------------------------------------------------------------
# Public wrapper
# ---------------------------------------------------------------------------
def upsample_nearest_2x(x, *, out_dtype=jnp.float32):
    """Nearest-neighbor 2x upsample of an NCHW tensor, i.e. the module's
    F.interpolate(x.float(), scale_factor=2.0, mode='nearest').

    out_dtype defaults to float32 (the module's forced cast); pass x.dtype
    (e.g. bf16) to cut HBM writeback bytes when the consumer allows it.
    """
    assert x.ndim == 4, "expected NCHW input"
    n, c, h, w = x.shape
    num_rows = n * c * h
    out_dtype = np.dtype(out_dtype)
    in_dtype = np.dtype(x.dtype)

    vmem_limit, block_budget = _vmem_caps()

    # ---- static path choice (no runtime try/except around the real call) ----
    g = _pick_group(num_rows, w, max_gw=512)
    if _replication_path_supported(g, w, in_dtype, out_dtype):
        kernel = functools.partial(_upsample_repl_kernel, g=g, w=w)
        extra_inputs, extra_specs = (), ()
    else:
        # Lane-dense matmul fallback: keep K = G*W as small as lane density
        # allows so the dense MXU work stays far below the HBM roofline; R is
        # resident (constant index_map -> DMA'd once, reused across the grid).
        g = _pick_group(num_rows, w, max_gw=64)
        r_mat = _replication_matrix(g, w)
        kernel = _upsample_mxu_kernel
        extra_inputs = (r_mat,)
        extra_specs = (pl.BlockSpec((g * w, 4 * g * w), lambda i: (0, 0)),)
        block_budget = max(1 << 20, block_budget - int(r_mat.size) * 4)

    grouped_rows = num_rows // g
    x2 = x.reshape(grouped_rows, g * w)            # free row-major view

    per_row = _per_row_bytes(g * w, in_dtype.itemsize, out_dtype.itemsize)
    rblk = _pick_row_block(grouped_rows, per_row, block_budget)
    grid = (pl.cdiv(grouped_rows, rblk),)

    out2 = pl.pallas_call(
        kernel,
        out_shape=jax.ShapeDtypeStruct((grouped_rows, 4 * g * w), out_dtype),
        grid=grid,
        in_specs=[pl.BlockSpec((rblk, g * w), lambda i: (i, 0)), *extra_specs],
        # NOTE: pipeline_mode=pl.Buffered(3) on out_specs is a cheap extra knob
        # for this writeback-dominated kernel once VMEM headroom is confirmed.
        out_specs=pl.BlockSpec((rblk, 4 * g * w), lambda i: (i, 0)),
        compiler_params=pltpu.CompilerParams(
            dimension_semantics=("parallel",),
            vmem_limit_bytes=vmem_limit,
        ),
    )(x2, *extra_inputs)

    return out2.reshape(n, c, 2 * h, 2 * w)        # free view back to NCHW


if __name__ == "__main__":
    key = jax.random.PRNGKey(0)
    N, C, H, W = 2, 4, 16, 16
    x = jax.random.normal(key, (N, C, H, W), dtype=jnp.float32)

    y = upsample_nearest_2x(x)
    y = jax.block_until_ready(y)

    # Reference: nearest-neighbor 2x upsample, float32 output.
    ref = jnp.repeat(jnp.repeat(x.astype(jnp.float32), 2, axis=2), 2, axis=3)

    assert y.shape == (N, C, 2 * H, 2 * W), y.shape
    assert y.dtype == jnp.float32, y.dtype
    assert jnp.allclose(y, ref, atol=1e-6, rtol=1e-6), "mismatch vs reference"

    print("KERNEL_OK")
</pallas_src>

<mosaic_0001>
module attributes {stable_mosaic.version = 11 : i64} {
  func.func @_upsample_mxu_kernel(%arg0: i32, %arg1: memref<8x64xf32, #tpu.memory_space<vmem>>, %arg2: memref<64x256xf32, #tpu.memory_space<vmem>>, %arg3: memref<8x256xf32, #tpu.memory_space<vmem>>) attributes {dimension_semantics = [#tpu.dimension_semantics<parallel>], iteration_bounds = array<i64: 4>, scalar_prefetch = 0 : i64, scratch_operands = 0 : i64, tpu.core_type = #tpu.core_type<tc>, window_params = [{transform_indices = @transform_0, window_bounds = array<i64: 8, 64>}, {pipeline_mode = #tpu.pipeline_mode<synchronous>, transform_indices = @transform_1, window_bounds = array<i64: 64, 256>}, {transform_indices = @transform_2, window_bounds = array<i64: 8, 256>}]} {
    %c0 = arith.constant 0 : index
    %c0_0 = arith.constant 0 : index
    %0 = vector.load %arg1[%c0, %c0_0] : memref<8x64xf32, #tpu.memory_space<vmem>>, vector<8x64xf32>
    %c0_1 = arith.constant 0 : index
    %c0_2 = arith.constant 0 : index
    %1 = vector.load %arg2[%c0_1, %c0_2] : memref<64x256xf32, #tpu.memory_space<vmem>>, vector<64x256xf32>
    %cst = arith.constant dense<0.000000e+00> : vector<8x256xf32>
    %2 = tpu.matmul %0, %1, %cst {dimension_numbers = #tpu.dot_dimension_numbers<[1], [0], [0], [1], [0, 0, 1, 1], [], []>} : vector<8x64xf32>, vector<64x256xf32>, vector<8x256xf32> -> vector<8x256xf32>
    %c0_3 = arith.constant 0 : index
    %c0_4 = arith.constant 0 : index
    %3 = vector.load %arg3[%c0_3, %c0_4] : memref<8x256xf32, #tpu.memory_space<vmem>>, vector<8x256xf32>
    tpu.vector_store %arg3[%c0_3, %c0_4], %2 {strides = array<i32>} : memref<8x256xf32, #tpu.memory_space<vmem>>, vector<8x256xf32>,
    return
  }
  func.func @transform_0(%arg0: i32) -> (i32, i32) {
    %c0_i32 = arith.constant 0 : i32
    %c0_i32_0 = arith.constant 0 : i32
    return %arg0, %c0_i32 : i32, i32
  }
  func.func @transform_1(%arg0: i32) -> (i32, i32) {
    %c0_i32 = arith.constant 0 : i32
    %c0_i32_0 = arith.constant 0 : i32
    %c0_i32_1 = arith.constant 0 : i32
    return %c0_i32, %c0_i32_0 : i32, i32
  }
  func.func @transform_2(%arg0: i32) -> (i32, i32) {
    %c0_i32 = arith.constant 0 : i32
    %c0_i32_0 = arith.constant 0 : i32
    return %arg0, %c0_i32 : i32, i32
  }
}

</mosaic_0001>

<bundles_post_ra>
// kernel: tpu_custom_call.1
= control target key start
LH: loop header
LB: loop body
LE: loop exit
PB: predicated region body
PF: predicated region fallthrough
CT: control target
= control target key end

     0   :  { %7 = vsyncpa [#allocation3], 0  ;;  %s703_s0 = inlined_call_operand.hbm [shape: f32[32,64], index: 0, kind: input, shape index: {}]   ;;  %s704_s1 = inlined_call_operand.hbm [shape: f32[64,256], index: 1, kind: input, shape index: {}]   ;;  %s705_s2 = inlined_call_operand.hbm [shape: f32[32,256], index: 2, kind: output, shape index: {}]  }
   0x1   :  { %9 = vsyncpa [#allocation3 + $0x1], 0 }
   0x2   :  { %10 = vsyncpa [#allocation6], 0 }
   0x3   :  { %11 = vsyncpa [#allocation4], 0 }
   0x4   :  { %13 = vsyncpa [#allocation4 + $0x1], 0  ;;  %s565_s9 = smov 0   ;;  %s567_s10 = smov 0  }
   0x5   :  { %s569_s11 = smov 0   ;;  %s571_s12 = smov 0  }
   0x6 LB: > { %s108_s15 = sshll.u32 %s704_s1, 4  ;;  %s589_s16 = sadd.s32 4294967295, %s545_s12   ;;  %s545_s12 = sphi %s571_s12, %s714_s12   ;;  %s541_s11 = sphi %s569_s11, %s713_s11   ;;  %s537_s10 = sphi %s567_s10, %s712_s10   ;;  %s533_s9 = sphi %s565_s9, %s711_s9   ;;  %s109_s15 = int_to_ptr.hbm [resolvable:$true] %s108_s15 }
   0x7   : > { %p339_p0 = scmp.ge.s32.totalorder %s545_s12, 1  ;;  %p40_p1 = scmp.eq.s32.totalorder %s589_s16, 0 }
   0x8   : > { %p97_p2 = scmp.lt.s32.totalorder %s545_s12, 5  ;;  %s547_s18 = smov [#allocation5]  }
   0x9   : > { %s110_s19 = sshll.u32 %s547_s18, 4  ;;  %s548_s20 = smov 256   ;;  %s111_s19 = int_to_ptr.vmem [resolvable:$true] %s110_s19 }
   0xa   : > { %p594_p3 = pnand %p339_p0, %p97_p2  ;;  %s549_s21 = smov 16  }
   0xb   : > { %s338_s22 = sadd.s32 4294967294, %s545_s12   ;;  %s604_s23 = sadd.s32 1, %s545_s12  }
   0xc   : > { %p364_p4 = pneg %p594_p3  ;;  %s26_s24 = sadd.s32 1, %s541_s11 }
   0xd   : > { %s23_s25 = ssub.s32 %s545_s12, %s604_s23  ;;  %p33_p6 = scmp.ne.s32.totalorder %s541_s11, %s537_s10 }
   0xe   : > { %p365_p5 = pnand %p364_p4, %p40_p1  ;;  %p24_p7 = scmp.eq.s32.totalorder %s23_s25, 0 }
   0xf   : > { %p34_p8 = scmp.eq.s32.totalorder %s545_s12, 0  ;;  %p39_p9 = scmp.ne.s32.totalorder %s537_s10, %s533_s9 }
  0x10   : > { %367 = dma.hbm_to_vmem [thread:$0]  (!%p365_p5), %s109_s15, 2048, %s111_s19, [#allocation6], %s548_s20, %s548_s20, %s549_s21  }
  0x11   : > { %p84_p10 = scmp.eq.s32.totalorder %s589_s16, 3  ;;  %p620_p11 = por %p40_p1, %p39_p9 }
  0x12   : > { %s616_s26 = scalar_select %p24_p7, %s541_s11, %s26_s24  }
  0x13   : > { %p624_p12 = por %p84_p10, %p33_p6  ;;  %p90_p13 = scmp.eq.s32.totalorder %s338_s22, 3 }
  0x14   : > { %p35_p0 = por %p34_p8, %p33_p6  ;;  %s124_s29 = sand.u32 1, %s541_s11  }
  0x15   : > { %p629_p2 = por %p90_p13, %p39_p9  ;;  %p377_p4 = scmp.lt.s32.totalorder %s545_s12, 4 }
  0x16   : > { %s342_s3 = sshll.u32 %s124_s29, 3  ;;  %s343_s4 = sshll.u32 %s545_s12, 3 }
  0x17   : > { %s132_s7 = scalar_lea.hbm %s703_s0, %s343_s4  ;;  %s128_s13 = scalar_lea.vmem [#allocation2], %s342_s3 }
  0x18   : > { %s134_s8 = sshll.u32 %s132_s7, 4  ;;  %s136_s14 = sshll.u32 %s128_s13, 4  ;;  %s135_s8 = int_to_ptr.hbm [resolvable:$true] %s134_s8  ;;  %s137_s14 = int_to_ptr.vmem [resolvable:$true] %s136_s14 }
  0x19   : > { %p638_p5 = pnand %p377_p4, %p35_p0  ;;  %s125_s18 = scalar_lea.sflag [#allocation3], %s124_s29 }
  0x1a   : > { %s445_s19 = sshra.s32 %s135_s8, 4  ;;  %s452_s24 = scalar_lea.hbm %s703_s0, 32  ;;  %s446_s19 = int_to_ptr.hbm [resolvable:$true] %s445_s19 }
  0x1b   : > { %s447_s20 = scalar_lea.hbm %s446_s19, 8  ;;  %p449_p7 = pneg %p638_p5 }
  0x1c   : > { %p448_p6 = scmp.ne.s32.totalorder %s446_s19, %s447_s20  ;;  %p453_p10 = scmp.lt.s32.totalorder %s446_s19, %s703_s0 }
  0x1d   : > { %p454_p13 = scmp.lt.s32.totalorder %s452_s24, %s447_s20 }
  0x1e   : > { %p450_p8 = pnand %p449_p7, %p448_p6 }
  0x1f   : > { %p455_p0 = por %p454_p13, %p453_p10 }
  0x20   : > { %p451_p9 = pneg %p450_p8 }
  0x22   : > { %p456_p4 = pnand %p455_p0, %p451_p9 }
  0x24   : > { %459 = shalt.err (!%p456_p4)
}
  0x25   : > { %371 = dma.hbm_to_vmem [thread:$0]  (!%p638_p5), %s135_s8, 128, %s137_s14, %s125_s18  }
  0x26   : > { %145 = sbr.rel (%p594_p3) target bundleno = 192 (0xc0), region = 28  ;;  %s655_s29 = sand.u32 (!%p594_p3), 1, %s537_s10  }
  0x27   : > { %s345_s4 = sshll.u32 (!%p594_p3), %s655_s29, 3  ;;  %s148_s5 = scalar_lea.sflag (!%p594_p3), [#allocation3], %s655_s29 }
  0x28   : > { %s659_s6 = scalar_lea.vmem (!%p594_p3), [#allocation2], %s345_s4 }
  0x2b   : > { %520 = dma.done.wait (%p620_p11), %s148_s5, 128  }
  0x2c   : > { %522 = vsyncadd (%p620_p11), %s148_s5, 4294967168 }
  0x2d   : > { %524 = dma.done.wait (%p40_p1), [#allocation6], 2048  }
  0x2e   : > { %526 = vsyncadd (%p40_p1), [#allocation6], 4294965248  ;;  %v193_v0 = vld [vmem:[#allocation5 + $0x70] sm:$0xff]  ;;  %v194_v1 = vld [vmem:[#allocation5 + $0x78] sm:$0xff]  ;;  %vm195_vm0 = vcmask 523264   ;;  %s347_s17 = sshll.u32 %s655_s29, 4 }
  0x2f   : > { %v191_v2 = vld [vmem:[#allocation5 + $0x60] sm:$0xff]  ;;  %207 = vmatpush.msra.mxu0 %v193_v0  ;;  %227 = vmatpush.msra.mxu1 %v194_v1  ;;  %v192_v3 = vld [vmem:[#allocation5 + $0x68] sm:$0xff]  ;;  %v189_v4 = vld [vmem:[#allocation5 + $0x50] sm:$0xff]  ;;  %s355_s27 = sshll.u32 %s589_s16, 4  ;;  %s177_s14 = scalar_lea.vmem [#allocation7], %s347_s17 }
  0x30   : > { %v190_v5 = vld [vmem:[#allocation5 + $0x58] sm:$0xff]  ;;  %v187_v6 = vld [vmem:[#allocation5 + $0x40] sm:$0xff]  ;;  %v188_v7 = vld [vmem:[#allocation5 + $0x48] sm:$0xff]  ;;  %s253_s13 = scalar_lea.hbm %s705_s2, %s355_s27  ;;  %s255_s15 = sshll.u32 %s177_s14, 4  ;;  %s256_s15 = int_to_ptr.vmem [resolvable:$true] %s255_s15 }
  0x31   : > { %208 = vmatpush.msra.mxu0 %v191_v2  ;;  %228 = vmatpush.msra.mxu1 %v192_v3  ;;  %v185_v8 = vld [vmem:[#allocation5 + $0x30] sm:$0xff]  ;;  %v186_v9 = vld [vmem:[#allocation5 + $0x38] sm:$0xff]  ;;  %v183_v10 = vld [vmem:[#allocation5 + $0x20] sm:$0xff]  ;;  %s257_s18 = sshll.u32 %s253_s13, 4  ;;  %s242_s19 = scalar_lea.sflag [#allocation4], %s655_s29  ;;  %s258_s18 = int_to_ptr.hbm [resolvable:$true] %s257_s18 }
  0x32   : > { %v184_v11 = vld [vmem:[#allocation5 + $0x28] sm:$0xff]  ;;  %v181_v12 = vld [vmem:[#allocation5 + $0x10] sm:$0xff]  ;;  %v182_v13 = vld [vmem:[#allocation5 + $0x18] sm:$0xff]  ;;  %s489_s20 = sshra.s32 %s258_s18, 4  ;;  %s495_s24 = scalar_lea.hbm %s705_s2, 64  ;;  %s490_s20 = int_to_ptr.hbm [resolvable:$true] %s489_s20 }
  0x33   : > { %209 = vmatpush.msra.mxu0 %v189_v4  ;;  %229 = vmatpush.msra.mxu1 %v190_v5  ;;  %v179_v14 = vld [vmem:[#allocation5] sm:$0xff]  ;;  %v180_v15 = vld [vmem:[#allocation5 + $0x8] sm:$0xff]  ;;  %v178_v16 = vld [vmem:[%s659_s6] sm:$0xff]  ;;  %s491_s21 = scalar_lea.hbm %s490_s20, 16  ;;  %p496_p5 = scmp.lt.s32.totalorder %s490_s20, %s705_s2 }
  0x34   : > { %p492_p1 = scmp.ne.s32.totalorder %s490_s20, %s491_s21  ;;  %p497_p6 = scmp.lt.s32.totalorder %s495_s24, %s491_s21 }
  0x35   : > { %210 = vmatpush.msra.mxu0 %v187_v6  ;;  %230 = vmatpush.msra.mxu1 %v188_v7 }
  0x36   : > { %p493_p3 = pnand %p492_p1, %p624_p12  ;;  %p498_p7 = por %p497_p6, %p496_p5 }
  0x37   : > { %211 = vmatpush.msra.mxu0 %v185_v8  ;;  %231 = vmatpush.msra.mxu1 %v186_v9 }
  0x38   : > { %p494_p11 = pneg %p493_p3 }
  0x39   : > { %212 = vmatpush.msra.mxu0 %v183_v10  ;;  %232 = vmatpush.msra.mxu1 %v184_v11 }
  0x3a   : > { %p499_p8 = pnand %p498_p7, %p494_p11 }
  0x3b   : > { %213 = vmatpush.msra.mxu0 %v181_v12  ;;  %233 = vmatpush.msra.mxu1 %v182_v13 }
  0x3d   : > { %214 = vmatpush.msra.mxu0 %v179_v14  ;;  %234 = vmatpush.msra.mxu1 %v180_v15 }
  0x3e   : > { %348 = vmatmul.msk.f32.vlgmr.msra.gmra.mxu0 %vm195_vm0, %v178_v16  ;;  %349 = vmatmul.msk.f32.vlgmr.msra.gmra.mxu1 %vm195_vm0, %v178_v16 }
  0xbb   : > { %v216_v17 = vpop.f32.mrf.mxu0  ;;  %v236_v18 = vpop.f32.mrf.mxu1 }
  0xbc   : > { %239 = vst [vmem:[%s177_s14] sm:$0xff] %v216_v17 }
  0xbd   : > { %240 = vst [vmem:[%s177_s14 + $0x8] sm:$0xff] %v236_v18 }
  0xbe   : > { %502 = shalt.err (!%p499_p8)
}
  0xbf   : > { %362 = dma.vmem_to_hbm [thread:$0]  (%p624_p12), %s256_s15, 256, %s258_s18, %s242_s19  }
  0xc0 PF: > { %p379_p9 = scmp.ge.s32.totalorder %s545_s12, 2  ;;  %s269_s29 = sand.u32 1, %s533_s9  }
  0xc1   : > { %s270_s4 = scalar_lea.sflag [#allocation4], %s269_s29 }
  0xc2   : > { %p373_p10 = pnand %p379_p9, %p629_p2 }
  0xc4   : > { %p374_p13 = pneg %p373_p10 }
  0xc6   : > { %528 = dma.done.wait (%p374_p13), %s270_s4, 256  }
  0xc7   : > { %530 = vsyncadd (%p374_p13), %s270_s4, 4294967040  ;;  %p16_p0 = scmp.ge.s32.totalorder %s604_s23, 6   ;;  %s711_s9 = smov %s537_s10 }
  0xc8   : > { %s712_s10 = smov %s541_s11  ;;  %s713_s11 = smov %s616_s26 }
  0xc9   : > { %s714_s12 = smov %s604_s23  ;;  %18 = sbr.rel (!%p16_p0) target bundleno = 6 (0x6), region = 77 }
  0xce   :  { %276 = vsyncpa [#allocation3], 1 }
  0xcf   :  { %278 = vsyncpa [#allocation3 + $0x1], 1 }
  0xd0   :  { %279 = vsyncpa [#allocation6], 1 }
  0xd1   :  { %280 = vsyncpa [#allocation4], 1 }
  0xd2   :  { %282 = vsyncpa [#allocation4 + $0x1], 1 }

</bundles_post_ra>
